<compile_context>
chip_gen: v7x
topology: tpu7x:2x2x1
jax: 0.10.0
libtpu: 0.0.40
codegen_flags: <defaults>
</compile_context>

<pallas_src>
import math
from functools import partial

import jax
import jax.numpy as jnp
from jax.experimental import pallas as pl
from jax.experimental.pallas import tpu as pltpu


def _round_up(x, m):
    return (x + m - 1) // m * m


# ----------------------------- in-kernel math --------------------------------

def _rmsnorm(x, w, b, eps, n_true):
    # LayerNormParameterized(use_mean=False, elementwise_scale=True,
    #                        elementwise_shift=True).  The feature axis is
    # zero-padded to a lane multiple, so the mean divides by the TRUE count.
    inv = jax.lax.rsqrt(
        jnp.sum(x * x, axis=-1, keepdims=True) * (1.0 / n_true) + eps)
    return w * (x * inv) + b


def _gelu_exact(x):
    # torch.nn.GELU() default = exact erf formulation
    return 0.5 * x * (1.0 + jax.lax.erf(x * (1.0 / math.sqrt(2.0))))


# -------------------------- fused multi-step kernel ---------------------------

def _speculator_kernel(x_ref, z_ref, w0_ref, w1_ref, ln_ref, head_ref,
                       logits_ref, state_ref, cell_ref, gates_ref,
                       *, alpha, eps, d_true, h_true, hp, scale_input):
    t = pl.program_id(1)   # speculator head / LSTM step
    j = pl.program_id(2)   # vocab tile

    # ------------------ LSTM recurrence (only at first V tile) ---------------
    @pl.when(j == 0)
    def _lstm_update():
        # Fused gate pre-activations: one [*, 4H] MXU matmul per step.
        @pl.when(t == 0)
        def _():
            x = x_ref[...].astype(jnp.float32)
            if scale_input:  # fused ln0: x <- rms_norm(x) / sqrt(2)
                inv = jax.lax.rsqrt(
                    jnp.sum(x * x, axis=-1, keepdims=True) * (1.0 / d_true)
                    + eps)
                x = x * inv * (1.0 / math.sqrt(2.0))
            gates_ref[...] = jnp.dot(x.astype(jnp.bfloat16), w0_ref[...],
                                     preferred_element_type=jnp.float32)
            cell_ref[...] = jnp.zeros_like(cell_ref)

        @pl.when(t > 0)
        def _():
            gates_ref[...] = jnp.dot(state_ref[...].astype(jnp.bfloat16),
                                     w1_ref[...],
                                     preferred_element_type=jnp.float32)

        g = gates_ref[...] + jnp.float32(alpha) * z_ref[...]
        sf = g[:, 0 * hp:1 * hp]
        si = g[:, 1 * hp:2 * hp]
        sc = g[:, 2 * hp:3 * hp]
        so = g[:, 3 * hp:4 * hp]

        forget_gate = jax.nn.sigmoid(sf)
        input_gate = jax.nn.sigmoid(si)
        output_gate = jax.nn.sigmoid(so)

        cln_w = ln_ref[0:1, :]
        cln_b = ln_ref[1:2, :]
        sln_w = ln_ref[2:3, :]
        sln_b = ln_ref[3:4, :]

        cand = _gelu_exact(_rmsnorm(sc, cln_w, cln_b, eps, h_true)) * input_gate
        new_cell = cell_ref[...] * forget_gate + cand
        cell_ref[...] = new_cell
        state_ref[...] = _gelu_exact(
            _rmsnorm(new_cell, sln_w, sln_b, eps, h_true)) * output_gate

    # ------------- tied prediction head, streamed over V tiles ---------------
    logits_ref[...] = jnp.dot(state_ref[...].astype(jnp.bfloat16),
                              head_ref[...],
                              preferred_element_type=jnp.float32
                              ).astype(logits_ref.dtype)


# ------------------------------ forward wrapper -------------------------------

def speculator_forward(params, state, inds, *, n_predict, alpha,
                       scale_input=True, eps=1e-6, tm=None, tv=None):
    """Pallas-backed forward. Returns [n_predict, B, N, V] f32 logits."""
    B, N, Din = state.shape
    H = params["cell_ln_w"].shape[-1]
    V = params["head_w"].shape[-1]
    R = B * N

    # ------------- tile sizes / padded dims (lanes: multiples of 128) --------
    if tm is None:
        tm = 128 if R >= 128 else _round_up(R, 8)
    Rp = _round_up(R, tm)
    Dp = _round_up(Din, 128)
    Hp = _round_up(H, 128)
    if tv is None:
        tv = 512 if V > 512 else _round_up(V, 128)
    Vp = _round_up(V, tv)

    f32, bf16 = jnp.float32, jnp.bfloat16

    # ------------------ pack / pad parameters (bf16 weights) -----------------
    def fuse_gates(ws):
        # [(in, H)] x 4 (forget, input, cell, output) -> [in, 4*Hp];
        # gate g occupies columns [g*Hp, g*Hp + H), rest zero.
        din = ws[0].shape[0]
        out = jnp.zeros((din, 4 * Hp), f32)
        for g, w in enumerate(ws):
            out = out.at[:, g * Hp:g * Hp + H].set(w.astype(f32))
        return out

    w0 = fuse_gates([params["forget_proj"][0], params["input_proj"][0],
                     params["cell_proj"][0], params["output_proj"][0]])
    w0 = jnp.pad(w0, ((0, Dp - Din), (0, 0))).astype(bf16)     # step 0
    w1 = fuse_gates([params["forget_proj"][1], params["input_proj"][1],
                     params["cell_proj"][1], params["output_proj"][1]])
    w1 = jnp.pad(w1, ((0, Hp - H), (0, 0))).astype(bf16)       # steps >= 1

    head_w = jnp.pad(params["head_w"].astype(f32),
                     ((0, Hp - H), (0, Vp - V))).astype(bf16)  # tied head

    ln_p = jnp.zeros((4, Hp), f32)      # rows: cln_w, cln_b, sln_w, sln_b
    ln_p = ln_p.at[0, :H].set(params["cell_ln_w"].reshape(-1))
    ln_p = ln_p.at[1, :H].set(params["cell_ln_b"].reshape(-1))
    ln_p = ln_p.at[2, :H].set(params["state_ln_w"].reshape(-1))
    ln_p = ln_p.at[3, :H].set(params["state_ln_b"].reshape(-1))

    # -------------- inputs: base state + pre-gathered embeddings -------------
    x = jnp.pad(state.reshape(R, Din).astype(f32),
                ((0, Rp - R), (0, Dp - Din)))

    idx = jnp.stack([inds[:, i:i + N] for i in range(n_predict)],
                    axis=0).reshape(n_predict, R)
    z = jnp.zeros((n_predict, R, 4 * Hp), f32)
    for g, name in enumerate(("forget_emb", "input_emb",
                              "cell_emb", "output_emb")):
        z = z.at[:, :, g * Hp:g * Hp + H].set(params[name][idx].astype(f32))
    z = jnp.pad(z, ((0, 0), (0, Rp - R), (0, 0)))

    # -------------------------------- pallas ---------------------------------
    grid = (Rp // tm, n_predict, Vp // tv)

    in_specs = [
        pl.BlockSpec((tm, Dp), lambda i, t, j: (i, 0)),               # x
        pl.BlockSpec((None, tm, 4 * Hp), lambda i, t, j: (t, i, 0)),  # z per step
        pl.BlockSpec((Dp, 4 * Hp), lambda i, t, j: (0, 0)),           # w0 (loaded once)
        pl.BlockSpec((Hp, 4 * Hp), lambda i, t, j: (0, 0)),           # w1 (loaded once)
        pl.BlockSpec((4, Hp), lambda i, t, j: (0, 0)),                # LN params
        pl.BlockSpec((Hp, tv), lambda i, t, j: (0, j)),               # head V tile
    ]
    out_specs = pl.BlockSpec((None, tm, tv), lambda i, t, j: (t, i, j))

    # TODO(synk): for very large H/V, raise vmem_limit_bytes and/or K-tile the
    # gate matmuls; at realistic speculator sizes the streamed head tiles keep
    # VMEM bounded already.
    logits = pl.pallas_call(
        partial(_speculator_kernel, alpha=float(alpha), eps=float(eps),
                d_true=Din, h_true=H, hp=Hp, scale_input=scale_input),
        out_shape=jax.ShapeDtypeStruct((n_predict, Rp, Vp), jnp.float32),
        grid_spec=pltpu.PrefetchScalarGridSpec(
            num_scalar_prefetch=0,
            grid=grid,
            in_specs=in_specs,
            out_specs=out_specs,
            scratch_shapes=[pltpu.VMEM((tm, Hp), jnp.float32),        # state
                            pltpu.VMEM((tm, Hp), jnp.float32),        # cell
                            pltpu.VMEM((tm, 4 * Hp), jnp.float32)]),  # gate preacts
        compiler_params=pltpu.CompilerParams(
            dimension_semantics=("parallel", "arbitrary", "arbitrary")),
    )(x, z, w0, w1, ln_p, head_w)

    return logits[:, :R, :V].reshape(n_predict, B, N, V)


# ------------------------- model (params + reference) -------------------------

def init_params(key, vocab_size, input_hidden_dim, hidden_dim):
    """Deterministic init mirroring ArcticLSTMSpeculator.reset_parameters()."""
    V, D, H = vocab_size, input_hidden_dim, hidden_dim
    ks = jax.random.split(key, 13)

    def lin(k, din, dout):  # torch Linear init: normal(0, 1/sqrt(min(shape)))
        std = 1.0 / math.sqrt(min(din, dout))
        return jax.random.normal(k, (din, dout), jnp.float32) * std

    def emb(k):
        std = 1.0 / math.sqrt(min(V, H))
        return jax.random.normal(k, (V, H), jnp.float32) * std

    return dict(
        forget_emb=emb(ks[0]),
        input_emb=emb(ks[1]),
        cell_emb=emb(ks[2]),
        output_emb=emb(ks[3]),
        # proj[0] consumes the base-model hidden state; proj[1] the recurrent
        # state (tie_weights=True -> steps >= 2 reuse proj[1]).
        forget_proj=[lin(ks[4], D, H), lin(ks[5], H, H)],
        input_proj=[lin(ks[6], D, H), lin(ks[7], H, H)],
        cell_proj=[lin(ks[8], D, H), lin(ks[9], H, H)],
        output_proj=[lin(ks[10], D, H), lin(ks[11], H, H)],
        cell_ln_w=jnp.ones((1, H), jnp.float32),
        cell_ln_b=jnp.zeros((1, H), jnp.float32),
        state_ln_w=jnp.ones((1, H), jnp.float32),
        state_ln_b=jnp.zeros((1, H), jnp.float32),
        head_w=lin(ks[12], H, V),   # single tied head
    )


def speculator_forward_ref(params, state, inds, *, n_predict, alpha,
                           scale_input=True, eps=1e-6):
    """Pure-JAX reference mirroring the PyTorch forward.  Matmuls use bf16
    inputs with f32 accumulation to match the kernel's MXU numerics."""
    B, N, D = state.shape
    H = params["cell_ln_w"].shape[-1]

    def mm(a, w):
        return jnp.dot(a.astype(jnp.bfloat16), w.astype(jnp.bfloat16),
                       preferred_element_type=jnp.float32)

    def rms(x, w, b):
        inv = jax.lax.rsqrt(jnp.mean(x * x, -1, keepdims=True) + eps)
        return w * (x * inv) + b

    x = state.astype(jnp.float32)
    if scale_input:
        x = x * jax.lax.rsqrt(jnp.mean(x * x, -1, keepdims=True) + eps)
        x = x / math.sqrt(2.0)

    cell = jnp.zeros((B, N, H), jnp.float32)
    a = alpha
    outs = []
    for i in range(n_predict):
        idx = inds[:, i:i + N]
        zf = params["forget_emb"][idx]
        zi = params["input_emb"][idx]
        zc = params["cell_emb"][idx]
        zo = params["output_emb"][idx]
        pi = 0 if i == 0 else 1
        fg = jax.nn.sigmoid(mm(x, params["forget_proj"][pi]) + a * zf)
        ig = jax.nn.sigmoid(mm(x, params["input_proj"][pi]) + a * zi)
        og = jax.nn.sigmoid(mm(x, params["output_proj"][pi]) + a * zo)
        cc = _gelu_exact(rms(mm(x, params["cell_proj"][pi]) + a * zc,
                             params["cell_ln_w"], params["cell_ln_b"])) * ig
        cell = cell * fg + cc
        x = _gelu_exact(rms(cell, params["state_ln_w"],
                            params["state_ln_b"])) * og
        outs.append(mm(x, params["head_w"]))
    return jnp.stack(outs, axis=0)


# ------------------------------------ main ------------------------------------

if __name__ == "__main__":
    # small config consistent with the module
    B, N = 2, 8
    n_predict = 3
    input_hidden_dim = 32
    hidden_dim = 32           # inner_dim = emb_dim = proj_dim
    vocab_size = 128

    state_weight = 0.5 ** (0.5 / n_predict)
    emb_weight = math.sqrt((1 - state_weight ** 2) * (hidden_dim / 2))
    alpha = emb_weight / state_weight

    key = jax.random.PRNGKey(0)
    k_params, k_state, k_inds = jax.random.split(key, 3)

    params = init_params(k_params, vocab_size, input_hidden_dim, hidden_dim)
    state = jax.random.normal(k_state, (B, N, input_hidden_dim), jnp.float32)
    inds = jax.random.randint(k_inds, (B, N + n_predict), 0, vocab_size,
                              dtype=jnp.int32)

    out = speculator_forward(params, state, inds, n_predict=n_predict,
                             alpha=alpha)
    out = jax.block_until_ready(out)
    assert out.shape == (n_predict, B, N, vocab_size)

    ref = speculator_forward_ref(params, state, inds, n_predict=n_predict,
                                 alpha=alpha)
    ref = jax.block_until_ready(ref)
    max_err = float(jnp.max(jnp.abs(out - ref)))
    assert jnp.allclose(out, ref, rtol=2e-2, atol=2e-2), max_err

    print("KERNEL_OK")
</pallas_src>

<mosaic_0001>
module attributes {stable_mosaic.version = 11 : i64} {
  func.func @_speculator_kernel(%arg0: i32, %arg1: i32, %arg2: i32, %arg3: memref<16x128xf32, #tpu.memory_space<vmem>>, %arg4: memref<1x16x512xf32, #tpu.memory_space<vmem>>, %arg5: memref<128x512xbf16, #tpu.memory_space<vmem>>, %arg6: memref<128x512xbf16, #tpu.memory_space<vmem>>, %arg7: memref<4x128xf32, #tpu.memory_space<vmem>>, %arg8: memref<128x128xbf16, #tpu.memory_space<vmem>>, %arg9: memref<1x16x128xf32, #tpu.memory_space<vmem>>, %arg10: memref<16x128xf32, #tpu.memory_space<vmem>>, %arg11: memref<16x128xf32, #tpu.memory_space<vmem>>, %arg12: memref<16x512xf32, #tpu.memory_space<vmem>>) attributes {dimension_semantics = [#tpu.dimension_semantics<parallel>, #tpu.dimension_semantics<arbitrary>, #tpu.dimension_semantics<arbitrary>], iteration_bounds = array<i64: 1, 3, 1>, scalar_prefetch = 0 : i64, scratch_operands = 3 : i64, tpu.core_type = #tpu.core_type<tc>, window_params = [{transform_indices = @transform_0, window_bounds = array<i64: 16, 128>}, {transform_indices = @transform_1, window_bounds = array<i64: 1, 16, 512>}, {pipeline_mode = #tpu.pipeline_mode<synchronous>, transform_indices = @transform_2, window_bounds = array<i64: 128, 512>}, {pipeline_mode = #tpu.pipeline_mode<synchronous>, transform_indices = @transform_3, window_bounds = array<i64: 128, 512>}, {pipeline_mode = #tpu.pipeline_mode<synchronous>, transform_indices = @transform_4, window_bounds = array<i64: 4, 128>}, {transform_indices = @transform_5, window_bounds = array<i64: 128, 128>}, {transform_indices = @transform_6, window_bounds = array<i64: 1, 16, 128>}]} {
    %c0_i32 = arith.constant 0 : i32
    %0 = arith.cmpi eq, %arg2, %c0_i32 : i32
    %1 = arith.extui %0 : i1 to i32
    %c0_i32_0 = arith.constant 0 : i32
    %2 = arith.cmpi ne, %1, %c0_i32_0 : i32
    scf.if %2 {
      %c0_i32_7 = arith.constant 0 : i32
      %10 = arith.cmpi eq, %arg1, %c0_i32_7 : i32
      %11 = arith.extui %10 : i1 to i32
      %c0_i32_8 = arith.constant 0 : i32
      %12 = arith.cmpi ne, %11, %c0_i32_8 : i32
      scf.if %12 {
        %c0_43 = arith.constant 0 : index
        %c0_44 = arith.constant 0 : index
        %96 = vector.load %arg3[%c0_43, %c0_44] : memref<16x128xf32, #tpu.memory_space<vmem>>, vector<16x128xf32>
        %97 = arith.mulf %96, %96 : vector<16x128xf32>
        %cst_45 = arith.constant dense<0.000000e+00> : vector<16xf32>
        %98 = vector.multi_reduction <add>, %97, %cst_45 [1] : vector<16x128xf32> to vector<16xf32>
        %99 = vector.shape_cast %98 : vector<16xf32> to vector<16x1xf32>
        %cst_46 = arith.constant 3.125000e-02 : f32
        %100 = vector.broadcast %cst_46 : f32 to vector<16x1xf32>
        %101 = arith.mulf %99, %100 : vector<16x1xf32>
        %cst_47 = arith.constant 9.99999997E-7 : f32
        %102 = vector.broadcast %cst_47 : f32 to vector<16x1xf32>
        %103 = arith.addf %101, %102 : vector<16x1xf32>
        %104 = math.rsqrt %103 : vector<16x1xf32>
        %105 = vector.broadcast %104 : vector<16x1xf32> to vector<16x128xf32>
        %106 = arith.mulf %96, %105 : vector<16x128xf32>
        %cst_48 = arith.constant 0.707106769 : f32
        %107 = vector.broadcast %cst_48 : f32 to vector<16x128xf32>
        %108 = arith.mulf %106, %107 : vector<16x128xf32>
        %109 = arith.truncf %108 : vector<16x128xf32> to vector<16x128xbf16>
        %c0_49 = arith.constant 0 : index
        %c0_50 = arith.constant 0 : index
        %110 = vector.load %arg5[%c0_49, %c0_50] : memref<128x512xbf16, #tpu.memory_space<vmem>>, vector<128x512xbf16>
        %cst_51 = arith.constant dense<0.000000e+00> : vector<16x512xf32>
        %111 = tpu.matmul %109, %110, %cst_51 {dimension_numbers = #tpu.dot_dimension_numbers<[1], [0], [0], [1], [0, 0, 1, 1], [], []>} : vector<16x128xbf16>, vector<128x512xbf16>, vector<16x512xf32> -> vector<16x512xf32>
        %c0_52 = arith.constant 0 : index
        %c0_53 = arith.constant 0 : index
        %112 = vector.load %arg12[%c0_52, %c0_53] : memref<16x512xf32, #tpu.memory_space<vmem>>, vector<16x512xf32>
        tpu.vector_store %arg12[%c0_52, %c0_53], %111 {strides = array<i32>} : memref<16x512xf32, #tpu.memory_space<vmem>>, vector<16x512xf32>,
        %cst_54 = arith.constant 0.000000e+00 : f32
        %113 = vector.broadcast %cst_54 : f32 to vector<16x128xf32>
        %c0_55 = arith.constant 0 : index
        %c0_56 = arith.constant 0 : index
        %114 = vector.load %arg11[%c0_55, %c0_56] : memref<16x128xf32, #tpu.memory_space<vmem>>, vector<16x128xf32>
        tpu.vector_store %arg11[%c0_55, %c0_56], %113 {strides = array<i32>} : memref<16x128xf32, #tpu.memory_space<vmem>>, vector<16x128xf32>,
      } else {
      }
      %c0_i32_9 = arith.constant 0 : i32
      %13 = arith.cmpi sgt, %arg1, %c0_i32_9 : i32
      %14 = arith.extui %13 : i1 to i32
      %c0_i32_10 = arith.constant 0 : i32
      %15 = arith.cmpi ne, %14, %c0_i32_10 : i32
      scf.if %15 {
        %c0_43 = arith.constant 0 : index
        %c0_44 = arith.constant 0 : index
        %96 = vector.load %arg10[%c0_43, %c0_44] : memref<16x128xf32, #tpu.memory_space<vmem>>, vector<16x128xf32>
        %97 = arith.truncf %96 : vector<16x128xf32> to vector<16x128xbf16>
        %c0_45 = arith.constant 0 : index
        %c0_46 = arith.constant 0 : index
        %98 = vector.load %arg6[%c0_45, %c0_46] : memref<128x512xbf16, #tpu.memory_space<vmem>>, vector<128x512xbf16>
        %cst_47 = arith.constant dense<0.000000e+00> : vector<16x512xf32>
        %99 = tpu.matmul %97, %98, %cst_47 {dimension_numbers = #tpu.dot_dimension_numbers<[1], [0], [0], [1], [0, 0, 1, 1], [], []>} : vector<16x128xbf16>, vector<128x512xbf16>, vector<16x512xf32> -> vector<16x512xf32>
        %c0_48 = arith.constant 0 : index
        %c0_49 = arith.constant 0 : index
        %100 = vector.load %arg12[%c0_48, %c0_49] : memref<16x512xf32, #tpu.memory_space<vmem>>, vector<16x512xf32>
        tpu.vector_store %arg12[%c0_48, %c0_49], %99 {strides = array<i32>} : memref<16x512xf32, #tpu.memory_space<vmem>>, vector<16x512xf32>,
      } else {
      }
      %c0_11 = arith.constant 0 : index
      %c0_12 = arith.constant 0 : index
      %16 = vector.load %arg12[%c0_11, %c0_12] : memref<16x512xf32, #tpu.memory_space<vmem>>, vector<16x512xf32>
      %c0_13 = arith.constant 0 : index
      %c0_14 = arith.constant 0 : index
      %c0_15 = arith.constant 0 : index
      %17 = vector.load %arg4[%c0_13, %c0_14, %c0_15] : memref<1x16x512xf32, #tpu.memory_space<vmem>>, vector<1x16x512xf32>
      %18 = vector.shape_cast %17 : vector<1x16x512xf32> to vector<16x512xf32>
      %cst_16 = arith.constant 2.03929806 : f32
      %19 = vector.broadcast %cst_16 : f32 to vector<16x512xf32>
      %20 = arith.mulf %19, %18 : vector<16x512xf32>
      %21 = arith.addf %16, %20 : vector<16x512xf32>
      %22 = vector.extract_strided_slice %21 {offsets = [0, 0], sizes = [16, 128], strides = [1, 1]} : vector<16x512xf32> to vector<16x128xf32>
      %23 = vector.extract_strided_slice %21 {offsets = [0, 128], sizes = [16, 128], strides = [1, 1]} : vector<16x512xf32> to vector<16x128xf32>
      %24 = vector.extract_strided_slice %21 {offsets = [0, 256], sizes = [16, 128], strides = [1, 1]} : vector<16x512xf32> to vector<16x128xf32>
      %25 = vector.extract_strided_slice %21 {offsets = [0, 384], sizes = [16, 128], strides = [1, 1]} : vector<16x512xf32> to vector<16x128xf32>
      %26 = arith.negf %22 : vector<16x128xf32>
      %27 = math.exp %26 : vector<16x128xf32>
      %cst_17 = arith.constant 1.000000e+00 : f32
      %28 = vector.broadcast %cst_17 : f32 to vector<16x128xf32>
      %29 = arith.addf %28, %27 : vector<16x128xf32>
      %30 = arith.divf %28, %29 : vector<16x128xf32>
      %31 = arith.negf %23 : vector<16x128xf32>
      %32 = math.exp %31 : vector<16x128xf32>
      %cst_18 = arith.constant 1.000000e+00 : f32
      %33 = vector.broadcast %cst_18 : f32 to vector<16x128xf32>
      %34 = arith.addf %33, %32 : vector<16x128xf32>
      %35 = arith.divf %33, %34 : vector<16x128xf32>
      %36 = arith.negf %25 : vector<16x128xf32>
      %37 = math.exp %36 : vector<16x128xf32>
      %cst_19 = arith.constant 1.000000e+00 : f32
      %38 = vector.broadcast %cst_19 : f32 to vector<16x128xf32>
      %39 = arith.addf %38, %37 : vector<16x128xf32>
      %40 = arith.divf %38, %39 : vector<16x128xf32>
      %c0_20 = arith.constant 0 : index
      %c0_21 = arith.constant 0 : index
      %41 = vector.load %arg7[%c0_20, %c0_21] : memref<4x128xf32, #tpu.memory_space<vmem>>, vector<1x128xf32>
      %c1 = arith.constant 1 : index
      %c0_22 = arith.constant 0 : index
      %42 = vector.load %arg7[%c1, %c0_22] : memref<4x128xf32, #tpu.memory_space<vmem>>, vector<1x128xf32>
      %c2 = arith.constant 2 : index
      %c0_23 = arith.constant 0 : index
      %43 = vector.load %arg7[%c2, %c0_23] : memref<4x128xf32, #tpu.memory_space<vmem>>, vector<1x128xf32>
      %c3 = arith.constant 3 : index
      %c0_24 = arith.constant 0 : index
      %44 = vector.load %arg7[%c3, %c0_24] : memref<4x128xf32, #tpu.memory_space<vmem>>, vector<1x128xf32>
      %45 = arith.mulf %24, %24 : vector<16x128xf32>
      %cst_25 = arith.constant dense<0.000000e+00> : vector<16xf32>
      %46 = vector.multi_reduction <add>, %45, %cst_25 [1] : vector<16x128xf32> to vector<16xf32>
      %47 = vector.shape_cast %46 : vector<16xf32> to vector<16x1xf32>
      %cst_26 = arith.constant 3.125000e-02 : f32
      %48 = vector.broadcast %cst_26 : f32 to vector<16x1xf32>
      %49 = arith.mulf %47, %48 : vector<16x1xf32>
      %cst_27 = arith.constant 9.99999997E-7 : f32
      %50 = vector.broadcast %cst_27 : f32 to vector<16x1xf32>
      %51 = arith.addf %49, %50 : vector<16x1xf32>
      %52 = math.rsqrt %51 : vector<16x1xf32>
      %53 = vector.broadcast %52 : vector<16x1xf32> to vector<16x128xf32>
      %54 = arith.mulf %24, %53 : vector<16x128xf32>
      %55 = vector.broadcast %41 : vector<1x128xf32> to vector<16x128xf32>
      %56 = arith.mulf %55, %54 : vector<16x128xf32>
      %57 = vector.broadcast %42 : vector<1x128xf32> to vector<16x128xf32>
      %58 = arith.addf %56, %57 : vector<16x128xf32>
      %cst_28 = arith.constant 5.000000e-01 : f32
      %59 = vector.broadcast %cst_28 : f32 to vector<16x128xf32>
      %60 = arith.mulf %59, %58 : vector<16x128xf32>
      %cst_29 = arith.constant 0.707106769 : f32
      %61 = vector.broadcast %cst_29 : f32 to vector<16x128xf32>
      %62 = arith.mulf %58, %61 : vector<16x128xf32>
      %63 = math.erf %62 : vector<16x128xf32>
      %cst_30 = arith.constant 1.000000e+00 : f32
      %64 = vector.broadcast %cst_30 : f32 to vector<16x128xf32>
      %65 = arith.addf %64, %63 : vector<16x128xf32>
      %66 = arith.mulf %60, %65 : vector<16x128xf32>
      %67 = arith.mulf %66, %35 : vector<16x128xf32>
      %c0_31 = arith.constant 0 : index
      %c0_32 = arith.constant 0 : index
      %68 = vector.load %arg11[%c0_31, %c0_32] : memref<16x128xf32, #tpu.memory_space<vmem>>, vector<16x128xf32>
      %69 = arith.mulf %68, %30 : vector<16x128xf32>
      %70 = arith.addf %69, %67 : vector<16x128xf32>
      %c0_33 = arith.constant 0 : index
      %c0_34 = arith.constant 0 : index
      %71 = vector.load %arg11[%c0_33, %c0_34] : memref<16x128xf32, #tpu.memory_space<vmem>>, vector<16x128xf32>
      tpu.vector_store %arg11[%c0_33, %c0_34], %70 {strides = array<i32>} : memref<16x128xf32, #tpu.memory_space<vmem>>, vector<16x128xf32>,
      %72 = arith.mulf %70, %70 : vector<16x128xf32>
      %cst_35 = arith.constant dense<0.000000e+00> : vector<16xf32>
      %73 = vector.multi_reduction <add>, %72, %cst_35 [1] : vector<16x128xf32> to vector<16xf32>
      %74 = vector.shape_cast %73 : vector<16xf32> to vector<16x1xf32>
      %cst_36 = arith.constant 3.125000e-02 : f32
      %75 = vector.broadcast %cst_36 : f32 to vector<16x1xf32>
      %76 = arith.mulf %74, %75 : vector<16x1xf32>
      %cst_37 = arith.constant 9.99999997E-7 : f32
      %77 = vector.broadcast %cst_37 : f32 to vector<16x1xf32>
      %78 = arith.addf %76, %77 : vector<16x1xf32>
      %79 = math.rsqrt %78 : vector<16x1xf32>
      %80 = vector.broadcast %79 : vector<16x1xf32> to vector<16x128xf32>
      %81 = arith.mulf %70, %80 : vector<16x128xf32>
      %82 = vector.broadcast %43 : vector<1x128xf32> to vector<16x128xf32>
      %83 = arith.mulf %82, %81 : vector<16x128xf32>
      %84 = vector.broadcast %44 : vector<1x128xf32> to vector<16x128xf32>
      %85 = arith.addf %83, %84 : vector<16x128xf32>
      %cst_38 = arith.constant 5.000000e-01 : f32
      %86 = vector.broadcast %cst_38 : f32 to vector<16x128xf32>
      %87 = arith.mulf %86, %85 : vector<16x128xf32>
      %cst_39 = arith.constant 0.707106769 : f32
      %88 = vector.broadcast %cst_39 : f32 to vector<16x128xf32>
      %89 = arith.mulf %85, %88 : vector<16x128xf32>
      %90 = math.erf %89 : vector<16x128xf32>
      %cst_40 = arith.constant 1.000000e+00 : f32
      %91 = vector.broadcast %cst_40 : f32 to vector<16x128xf32>
      %92 = arith.addf %91, %90 : vector<16x128xf32>
      %93 = arith.mulf %87, %92 : vector<16x128xf32>
      %94 = arith.mulf %93, %40 : vector<16x128xf32>
      %c0_41 = arith.constant 0 : index
      %c0_42 = arith.constant 0 : index
      %95 = vector.load %arg10[%c0_41, %c0_42] : memref<16x128xf32, #tpu.memory_space<vmem>>, vector<16x128xf32>
      tpu.vector_store %arg10[%c0_41, %c0_42], %94 {strides = array<i32>} : memref<16x128xf32, #tpu.memory_space<vmem>>, vector<16x128xf32>,
    } else {
    }
    %c0 = arith.constant 0 : index
    %c0_1 = arith.constant 0 : index
    %3 = vector.load %arg10[%c0, %c0_1] : memref<16x128xf32, #tpu.memory_space<vmem>>, vector<16x128xf32>
    %4 = arith.truncf %3 : vector<16x128xf32> to vector<16x128xbf16>
    %c0_2 = arith.constant 0 : index
    %c0_3 = arith.constant 0 : index
    %5 = vector.load %arg8[%c0_2, %c0_3] : memref<128x128xbf16, #tpu.memory_space<vmem>>, vector<128x128xbf16>
    %cst = arith.constant dense<0.000000e+00> : vector<16x128xf32>
    %6 = tpu.matmul %4, %5, %cst {dimension_numbers = #tpu.dot_dimension_numbers<[1], [0], [0], [1], [0, 0, 1, 1], [], []>} : vector<16x128xbf16>, vector<128x128xbf16>, vector<16x128xf32> -> vector<16x128xf32>
    %c0_4 = arith.constant 0 : index
    %c0_5 = arith.constant 0 : index
    %c0_6 = arith.constant 0 : index
    %7 = vector.load %arg9[%c0_4, %c0_5, %c0_6] : memref<1x16x128xf32, #tpu.memory_space<vmem>>, vector<1x16x128xf32>
    %8 = vector.shape_cast %7 : vector<1x16x128xf32> to vector<16x128xf32>
    %9 = vector.shape_cast %6 : vector<16x128xf32> to vector<1x16x128xf32>
    tpu.vector_store %arg9[%c0_4, %c0_5, %c0_6], %9 {strides = array<i32>} : memref<1x16x128xf32, #tpu.memory_space<vmem>>, vector<1x16x128xf32>,
    return
  }
  func.func @transform_0(%arg0: i32, %arg1: i32, %arg2: i32) -> (i32, i32) {
    %c0_i32 = arith.constant 0 : i32
    %c0_i32_0 = arith.constant 0 : i32
    return %arg0, %c0_i32 : i32, i32
  }
  func.func @transform_1(%arg0: i32, %arg1: i32, %arg2: i32) -> (i32, i32, i32) {
    %c0_i32 = arith.constant 0 : i32
    %c0_i32_0 = arith.constant 0 : i32
    return %arg1, %arg0, %c0_i32 : i32, i32, i32
  }
  func.func @transform_2(%arg0: i32, %arg1: i32, %arg2: i32) -> (i32, i32) {
    %c0_i32 = arith.constant 0 : i32
    %c0_i32_0 = arith.constant 0 : i32
    %c0_i32_1 = arith.constant 0 : i32
    return %c0_i32, %c0_i32_0 : i32, i32
  }
  func.func @transform_3(%arg0: i32, %arg1: i32, %arg2: i32) -> (i32, i32) {
    %c0_i32 = arith.constant 0 : i32
    %c0_i32_0 = arith.constant 0 : i32
    %c0_i32_1 = arith.constant 0 : i32
    return %c0_i32, %c0_i32_0 : i32, i32
  }
  func.func @transform_4(%arg0: i32, %arg1: i32, %arg2: i32) -> (i32, i32) {
    %c0_i32 = arith.constant 0 : i32
    %c0_i32_0 = arith.constant 0 : i32
    %c0_i32_1 = arith.constant 0 : i32
    return %c0_i32, %c0_i32_0 : i32, i32
  }
  func.func @transform_5(%arg0: i32, %arg1: i32, %arg2: i32) -> (i32, i32) {
    %c0_i32 = arith.constant 0 : i32
    %c0_i32_0 = arith.constant 0 : i32
    return %c0_i32, %arg2 : i32, i32
  }
  func.func @transform_6(%arg0: i32, %arg1: i32, %arg2: i32) -> (i32, i32, i32) {
    %c0_i32 = arith.constant 0 : i32
    return %arg1, %arg0, %arg2 : i32, i32, i32
  }
}

</mosaic_0001>

<bundles_post_ra>
// kernel: tpu_custom_call.1
= control target key start
LH: loop header
LB: loop body
LE: loop exit
PB: predicated region body
PF: predicated region fallthrough
CT: control target
= control target key end

     0   :  { %s2426_s0 = inlined_call_operand.hbm [shape: f32[16,128], index: 0, kind: input, shape index: {}]   ;;  %s2427_s1 = inlined_call_operand.hbm [shape: f32[3,16,512], index: 1, kind: input, shape index: {}]   ;;  %s2428_s2 = inlined_call_operand.hbm [shape: bf16[128,512], index: 2, kind: input, shape index: {}]   ;;  %s2429_s3 = inlined_call_operand.hbm [shape: bf16[128,512], index: 3, kind: input, shape index: {}]   ;;  %s2430_s4 = inlined_call_operand.vmem [shape: f32[4,128], index: 4, kind: input, shape index: {}]   ;;  %s2431_s5 = inlined_call_operand.hbm [shape: bf16[128,128], index: 5, kind: input, shape index: {}]   ;;  %s2432_s6 = inlined_call_operand.hbm [shape: f32[3,16,128], index: 6, kind: output, shape index: {}]  }
   0x1   :  { %2437 = sst [smem:[#allocation21_spill]] %s2428_s2 }
   0x2   :  { %11 = vsyncpa [#allocation6], 0 }
   0x3   :  { %12 = vsyncpa [#allocation9], 0 }
   0x4   :  { %14 = vsyncpa [#allocation9 + $0x1], 0 }
   0x5   :  { %15 = vsyncpa [#allocation12], 0 }
   0x6   :  { %16 = vsyncpa [#allocation7], 0 }
   0x7   :  { %18 = vsyncpa [#allocation7 + $0x1], 0  ;;  %s2101_s21 = smov 0   ;;  %s2103_s22 = smov 0  }
   0x8   :  { %s2105_s23 = smov 0   ;;  %s2107_s24 = smov 0  }
   0x9   :  { %s2109_s25 = smov 0   ;;  %s2111_s26 = smov 0  }
   0xa LB: > { %s2132_s27 = sadd.s32 4294967295, %s2043_s26   ;;  %s1404_s28 = sadd.s32 4294967294, %s2043_s26   ;;  %s2043_s26 = sphi %s2111_s26, %s24_s26   ;;  %s2039_s25 = sphi %s2109_s25, %s2462_s25   ;;  %s2035_s24 = sphi %s2107_s24, %s2461_s24   ;;  %s2031_s23 = sphi %s2105_s23, %s2460_s23   ;;  %s2027_s22 = sphi %s2103_s22, %s2459_s22   ;;  %s2023_s21 = sphi %s2101_s21, %s2458_s21  }
   0xb   : > { %p91_p0 = scmp.ne.s32.totalorder %s2027_s22, %s2023_s21  ;;  %p2433_p1 = scmp.eq.s32.totalorder %s2132_s27, 0 }
   0xc   : > { %p214_p3 = scmp.eq.s32.totalorder %s1404_s28, 2  ;;  %p1405_p5 = scmp.ge.s32.totalorder %s2043_s26, 1 }
   0xd   : > { %p2141_p4 = por %p2433_p1, %p91_p0  ;;  %p221_p7 = scmp.lt.s32.totalorder %s2043_s26, 4 }
   0xe   : > { %p2146_p6 = por %p214_p3, %p91_p0  ;;  %s2045_s8 = smov [#allocation10]  }
   0xf   : > { %s2438_s29 = scalar_select %p2141_p4, 1, 0 }
  0x10   : > { %s2439_s30 = scalar_select %p2146_p6, 1, 0 }
  0x11   : > { %p2151_p8 = pnand %p1405_p5, %p221_p7  ;;  %s249_s9 = sshll.u32 %s2045_s8, 4  ;;  %s250_s9 = int_to_ptr.vmem [resolvable:$true] %s249_s9 }
  0x12   : > { %2440 = sst [smem:[#allocation20_spill]] %s2439_s30  ;;  %s2046_s11 = smov [#allocation11]  }
  0x13   : > { %s2441_s7 = scalar_select %p2151_p8, 1, 0 }
  0x14   : > { %p1561_p9 = pneg %p2151_p8  ;;  %s262_s12 = sshll.u32 %s2046_s11, 4  ;;  %s2163_s12 = int_to_ptr.vmem [resolvable:$true] %s262_s12 }
  0x15   : > { %s2443_s2 = sld [smem:[#allocation21_spill]] }
  0x16   : > { %p2159_p10 = pnand %p1561_p9, %p2433_p1 }
  0x18   : > { %p2173_p12 = pneg %p2159_p10 }
  0x1b   : > { %s1807_s15 = scalar_lea.hbm %s2443_s2, 4096 }
  0x1c   : > { %p1808_p11 = scmp.ne.s32.totalorder %s2443_s2, %s1807_s15  ;;  %p1814_p3 = scmp.lt.u32.totalorder %s1807_s15, %s2443_s2 }
  0x1e   : > { %p1810_p13 = pnand %p2173_p12, %p1808_p11 }
  0x20   : > { %p1811_p0 = pneg %p1810_p13 }
  0x22   : > { %p1816_p5 = pnand %p1814_p3, %p1811_p0 }
  0x24   : > { %1819 = shalt.err (!%p1816_p5)
}
  0x25   : > { %s1820_s28 = scalar_lea.vmem %s250_s9, 4096  ;;  %p1828_p2 = scmp.lt.s32.totalorder %s250_s9, %s250_s9 }
  0x26   : > { %p1821_p7 = scmp.ne.s32.totalorder %s250_s9, %s1820_s28  ;;  %p1829_p6 = scmp.lt.s32.totalorder %s1820_s28, %s1820_s28 }
  0x28   : > { %p1823_p9 = pnand %p1821_p7, %p2173_p12  ;;  %p1830_p4 = por %p1829_p6, %p1828_p2 }
  0x2a   : > { %p1824_p1 = pneg %p1823_p9 }
  0x2c   : > { %p1831_p8 = pnand %p1830_p4, %p1824_p1 }
  0x2e   : > { %1834 = shalt.err (!%p1831_p8)
}
  0x2f   : > { %s2047_s8 = smov 256   ;;  %s2048_s11 = smov 16  }
  0x30   : > { %1567 = dma.hbm_to_vmem [thread:$0]  (!%p2159_p10), %s2443_s2, 4096, %s250_s9, [#allocation9], %s2047_s8, %s2047_s8, %s2048_s11  }
  0x31   : > { %s1835_s17 = scalar_lea.hbm %s2429_s3, 4096 }
  0x32   : > { %p1836_p11 = scmp.ne.s32.totalorder %s2429_s3, %s1835_s17  ;;  %p1842_p4 = scmp.lt.u32.totalorder %s1835_s17, %s2429_s3 }
  0x34   : > { %p1838_p1 = pnand %p1836_p11, %p2173_p12 }
  0x36   : > { %p1839_p2 = pneg %p1838_p1 }
  0x38   : > { %p1844_p6 = pnand %p1842_p4, %p1839_p2 }
  0x3a   : > { %1847 = shalt.err (!%p1844_p6)
}
  0x3b   : > { %s1848_s9 = scalar_lea.vmem %s2163_s12, 4096  ;;  %p1856_p3 = scmp.lt.s32.totalorder %s2163_s12, %s2163_s12 }
  0x3c   : > { %p1849_p8 = scmp.ne.s32.totalorder %s2163_s12, %s1848_s9  ;;  %p1857_p5 = scmp.lt.s32.totalorder %s1848_s9, %s1848_s9 }
  0x3e   : > { %p1851_p13 = pnand %p1849_p8, %p2173_p12  ;;  %p1858_p7 = por %p1857_p5, %p1856_p3 }
  0x40   : > { %p1852_p0 = pneg %p1851_p13 }
  0x42   : > { %p1859_p9 = pnand %p1858_p7, %p1852_p0 }
  0x44   : > { %1862 = shalt.err (!%p1859_p9)
}
  0x45   : > { %1570 = dma.hbm_to_vmem [thread:$0]  (!%p2159_p10), %s2429_s3, 4096, %s2163_s12, [#allocation12], %s2047_s8, %s2047_s8, %s2048_s11  }
  0x46   : > { %s2049_s14 = smov [#allocation5]   ;;  %s1863_s19 = scalar_lea.hbm %s2426_s0, 256 }
  0x47   : > { %s236_s15 = sshll.u32 %s2049_s14, 4  ;;  %p1864_p11 = scmp.ne.s32.totalorder %s2426_s0, %s1863_s19  ;;  %s237_s15 = int_to_ptr.vmem [resolvable:$true] %s236_s15 }
  0x48   : > { %p1870_p4 = scmp.lt.u32.totalorder %s1863_s19, %s2426_s0 }
  0x49   : > { %p1866_p1 = pnand %p1864_p11, %p2173_p12 }
  0x4b   : > { %p1867_p2 = pneg %p1866_p1 }
  0x4d   : > { %p1872_p6 = pnand %p1870_p4, %p1867_p2 }
  0x4f   : > { %1875 = shalt.err (!%p1872_p6)
}
  0x50   : > { %s1876_s12 = scalar_lea.vmem %s237_s15, 256  ;;  %p1884_p3 = scmp.lt.s32.totalorder %s237_s15, %s237_s15 }
  0x51   : > { %p1877_p8 = scmp.ne.s32.totalorder %s237_s15, %s1876_s12  ;;  %p1885_p5 = scmp.lt.s32.totalorder %s1876_s12, %s1876_s12 }
  0x53   : > { %p1879_p13 = pnand %p1877_p8, %p2173_p12  ;;  %p1886_p7 = por %p1885_p5, %p1884_p3 }
  0x55   : > { %p1880_p0 = pneg %p1879_p13 }
  0x57   : > { %p1887_p9 = pnand %p1886_p7, %p1880_p0 }
  0x59   : > { %1890 = shalt.err (!%p1887_p9)
}
  0x5a   : > { %s2050_s8 = smov 128   ;;  %s2051_s11 = smov 8  }
  0x5b   : > { %1564 = dma.hbm_to_vmem [thread:$0]  (!%p2159_p10), %s2426_s0, 256, %s237_s15, [#allocation6], %s2050_s8, %s2050_s8, %s2051_s11  }
  0x5c   : > { %s2052_s13 = smov [#allocation13]   ;;  %s1891_s19 = scalar_lea.hbm %s2431_s5, 1024 }
  0x5d   : > { %s280_s14 = sshll.u32 %s2052_s13, 4  ;;  %p1892_p11 = scmp.ne.s32.totalorder %s2431_s5, %s1891_s19  ;;  %s281_s14 = int_to_ptr.vmem [resolvable:$true] %s280_s14 }
  0x5e   : > { %p1898_p4 = scmp.lt.u32.totalorder %s1891_s19, %s2431_s5 }
  0x5f   : > { %p1894_p1 = pnand %p1892_p11, %p2173_p12 }
  0x61   : > { %p1895_p2 = pneg %p1894_p1 }
  0x63   : > { %p1900_p6 = pnand %p1898_p4, %p1895_p2 }
  0x65   : > { %1903 = shalt.err (!%p1900_p6)
}
  0x66   : > { %s1904_s15 = scalar_lea.vmem %s281_s14, 1024  ;;  %p1912_p3 = scmp.lt.s32.totalorder %s281_s14, %s281_s14 }
  0x67   : > { %p1905_p8 = scmp.ne.s32.totalorder %s281_s14, %s1904_s15  ;;  %p1913_p5 = scmp.lt.s32.totalorder %s1904_s15, %s1904_s15 }
  0x69   : > { %p1907_p13 = pnand %p1905_p8, %p2173_p12  ;;  %p1914_p7 = por %p1913_p5, %p1912_p3 }
  0x6b   : > { %p1908_p0 = pneg %p1907_p13 }
  0x6d   : > { %p1915_p9 = pnand %p1914_p7, %p1908_p0 }
  0x6f   : > { %1918 = shalt.err (!%p1915_p9)
}
  0x70   : > { %s2053_s8 = smov 64   ;;  %s2054_s18 = smov 4  }
  0x71   : > { %1573 = dma.hbm_to_vmem [thread:$0]  (!%p2159_p10), %s2431_s5, 1024, %s281_s14, [#allocation12], %s2053_s8, %s2053_s8, %s2054_s18  }
  0x72   : > { %s39_s30 = sadd.s32 1, %s2039_s25  ;;  %s78_s13 = sadd.s32 1, %s2031_s23 }
  0x73   : > { %p41_p12 = scmp.ge.s32.totalorder %s39_s30, 3  ;;  %p85_p11 = scmp.ne.s32.totalorder %s2031_s23, %s2027_s22 }
  0x74   : > { %p86_p1 = scmp.eq.s32.totalorder %s2043_s26, 0  ;;  %p1586_p2 = scmp.lt.s32.totalorder %s2043_s26, 3 }
  0x75   : > { %s2464_s30 = smov (%p41_p12, %s39_s30), 0  ;;  %p2445_p6 = scmp.eq.s32.totalorder %s2132_s27, 2 }
  0x76   : > { %p87_p4 = por %p86_p1, %p85_p11  ;;  %s73_s10 = ssub.s32 %s2039_s25, %s2464_s30 }
  0x77   : > { %p2258_p8 = por %p2445_p6, %p85_p11  ;;  %s294_s17 = sand.u32 1, %s2043_s26  }
  0x78   : > { %p76_p13 = scmp.eq.s32.totalorder %s73_s10, 0  ;;  %s296_s19 = sand.u32 1, %s2031_s23  }
  0x79   : > { %s1510_s14 = sshll.u32 %s2039_s25, 10  ;;  %s1411_s28 = sshll.u32 %s296_s19, 6 }
  0x7a   : > { %s2268_s20 = scalar_select %p76_p13, %s2031_s23, %s78_s13  }
  0x7b   : > { %s2273_s15 = scalar_lea.hbm %s2427_s1, %s1510_s14  ;;  %p2275_p10 = pnand %p1586_p2, %p87_p4 }
  0x7c   : > { %s298_s18 = scalar_lea.vmem [#allocation8], %s1411_s28  ;;  %s2281_s2 = scalar_lea.sflag [#allocation9], %s294_s17 }
  0x7d   : > { %s308_s11 = sshll.u32 %s298_s18, 4  ;;  %s1919_s13 = scalar_lea.hbm %s2273_s15, 1024  ;;  %s2279_s11 = int_to_ptr.vmem [resolvable:$true] %s308_s11 }
  0x7e   : > { %p1920_p0 = scmp.ne.s32.totalorder %s2273_s15, %s1919_s13  ;;  %p1921_p3 = pneg %p2275_p10 }
  0x7f   : > { %s1924_s14 = scalar_lea.hbm %s2427_s1, 3072  ;;  %p1925_p9 = scmp.lt.u32.totalorder %s2273_s15, %s2427_s1 }
  0x80   : > { %p1922_p5 = pnand %p1921_p3, %p1920_p0  ;;  %p1926_p12 = scmp.lt.u32.totalorder %s1924_s14, %s1919_s13 }
  0x81   : > { %p1928_p1 = scmp.lt.u32.totalorder %s1919_s13, %s2273_s15 }
  0x82   : > { %p1923_p7 = pneg %p1922_p5  ;;  %p1927_p11 = por %p1926_p12, %p1925_p9 }
  0x84   : > { %p1929_p2 = por %p1928_p1, %p1927_p11 }
  0x86   : > { %p1930_p4 = pnand %p1929_p2, %p1923_p7 }
  0x88   : > { %1933 = shalt.err (!%p1930_p4)
}
  0x89   : > { %s1934_s17 = scalar_lea.vmem %s2279_s11, 1024  ;;  %s2055_s28 = smov [#allocation8]  }
  0x8a   : > { %p1935_p6 = scmp.ne.s32.totalorder %s2279_s11, %s1934_s17  ;;  %s1939_s18 = sshll.u32 %s2055_s28, 4  ;;  %s1940_s18 = int_to_ptr.vmem [resolvable:$false] %s1939_s18 }
  0x8b   : > { %s1941_s10 = scalar_lea.vmem %s1940_s18, 2048  ;;  %p1942_p5 = scmp.lt.s32.totalorder %s2279_s11, %s1940_s18 }
  0x8c   : > { %p1937_p13 = pnand %p1935_p6, %p1921_p3  ;;  %p1943_p9 = scmp.lt.s32.totalorder %s1941_s10, %s1934_s17 }
  0x8e   : > { %p1938_p0 = pneg %p1937_p13  ;;  %p1944_p12 = por %p1943_p9, %p1942_p5 }
  0x90   : > { %p1945_p11 = pnand %p1944_p12, %p1938_p0 }
  0x92   : > { %1948 = shalt.err (!%p1945_p11)
}
  0x93   : > { %s2056_s13 = smov 512   ;;  %s2057_s19 = smov 32  }
  0x94   : > { %1577 = dma.hbm_to_vmem [thread:$0]  (!%p2275_p10), %s2273_s15, 1024, %s2279_s11, %s2281_s2, %s2056_s13, %s2056_s13, %s2057_s19  }
  0x95   : > { %p2448_p3 = scmp.ne.s32.totalorder %s2441_s7, 0 }
  0x96   : > { %p2449_p7 = scmp.eq.s32.totalorder (!%p2448_p3), %s2132_s27, 0 }
  0x97   : > { %320 = sbr.rel (%p2448_p3) target bundleno = 1419 (0x58b), region = 44 }
  0x9e   : > { %2002 = dma.done.wait (%p2449_p7), [#allocation6], 256   ;;  %p2450_p1 = pmov %p2449_p7 }
  0x9f   : > { %s326_s14 = sand.u32 1, %s2132_s27   ;;  %s2317_s9 = sand.u32 1, %s2027_s22  }
  0xa0   : > { %2004 = vsyncadd (%p2450_p1), [#allocation6], 4294967040  ;;  %s1416_s12 = sshll.u32 %s2317_s9, 6  ;;  %s327_s17 = scalar_lea.sflag [#allocation9], %s326_s14 }
  0xa1   : > { %s2320_s8 = scalar_lea.vmem [#allocation8], %s1416_s12  ;;  %p2451_p10 = scmp.ne.s32.totalorder %s2438_s29, 0 }
  0xa3   : > { %2006 = dma.done.wait (%p2451_p10), %s327_s17, 1024  }
  0xa4   : > { %2008 = vsyncadd (%p2451_p10), %s327_s17, 4294966272  ;;  %p2452_p2 = pmov %p2450_p1 }
  0xa5   : > { %p2453_p4 = pmov %p2450_p1 }
  0xa6   : > { %2010 = dma.done.wait (%p2452_p2), [#allocation9], 4096  }
  0xa7   : > { %2012 = vsyncadd (%p2453_p4), [#allocation9], 4294963200  ;;  %p2454_p6 = pmov %p2450_p1 }
  0xa8   : > { %p2455_p13 = pmov %p2450_p1 }
  0xa9   : > { %2014 = dma.done.wait (%p2454_p6), [#allocation12], 5120  }
  0xaa   : > { %2016 = vsyncadd (%p2455_p13), [#allocation12], 4294962176  ;;  %s1420_s7 = sshll.u32 %s2317_s9, 4  ;;  %p1421_p0 = scmp.ne.s32.totalorder %s2035_s24, 0 }
  0xab   : > { %s2335_s15 = scalar_lea.vmem [#allocation14], %s1420_s7  ;;  %v2338_v0 = vld [vmem:[#allocation5] sm:$0xff] (!%p1421_p0)  ;;  %v2340_v1 = vld [vmem:[#allocation5 + $0x8] sm:$0xff] (!%p1421_p0)  ;;  %v2058_v30 = vmov (!%p1421_p0), 0   ;;  %v2059_v50 = vmov (!%p1421_p0), 0.0  }
  0xac   : > { %382 = sbr.rel (%p1421_p0) target bundleno = 557 (0x22d), region = 72  ;;  %v385_v2 = vmul.f32 (!%p1421_p0), %v2338_v0, %v2338_v0  ;;  %v1659_v3 = vld [vmem:[#allocation10 + $0x4] ss:$16 sps:$4 sm:$0xff] (!%p1421_p0)   ;;  %v1661_v4 = vld [vmem:[#allocation10 + $0xc] ss:$16 sps:$4 sm:$0xff] (!%p1421_p0)   ;;  %v386_v6 = vmul.f32 (!%p1421_p0), %v2340_v1, %v2340_v1  ;;  %626 = vmatprep.mubr.bf16.mxu0 (!%p1421_p0), %v2058_v30  ;;  %669 = vmatprep.mubr.bf16.mxu1 (!%p1421_p0), %v2058_v30  ;;  %688 = vst [vmem:[#allocation3] sm:$0xff] (!%p1421_p0), %v2059_v50 }
  0xad   : > { %v1663_v5 = vld [vmem:[#allocation10] ss:$16 sps:$4 sm:$0xff] (!%p1421_p0)   ;;  %594 = vmatprep.subr.bf16.mxu0 (!%p1421_p0), %v1659_v3  ;;  %v1664_v7 = vld [vmem:[#allocation10 + $0x8] ss:$16 sps:$4 sm:$0xff] (!%p1421_p0)   ;;  %637 = vmatprep.subr.bf16.mxu1 (!%p1421_p0), %v1661_v4  ;;  %v1665_v8 = vld [vmem:[#allocation10 + $0x24] ss:$16 sps:$4 sm:$0xff] (!%p1421_p0)  }
  0xae   : > { %387 = vadd.xlane.f32.xlu0 (!%p1421_p0), %v385_v2  ;;  %595 = vmatpush1.bf16.msra.mxu0 (!%p1421_p0), %v1663_v5  ;;  %v1667_v9 = vld [vmem:[#allocation10 + $0x2c] ss:$16 sps:$4 sm:$0xff] (!%p1421_p0)   ;;  %v1669_v10 = vld [vmem:[#allocation10 + $0x20] ss:$16 sps:$4 sm:$0xff] (!%p1421_p0)   ;;  %v1670_v11 = vld [vmem:[#allocation10 + $0x28] ss:$16 sps:$4 sm:$0xff] (!%p1421_p0)  }
  0xaf   : > { %638 = vmatpush1.bf16.msra.mxu1 (!%p1421_p0), %v1664_v7  ;;  %596 = vmatprep.subr.bf16.mxu0 (!%p1421_p0), %v1665_v8  ;;  %v1671_v12 = vld [vmem:[#allocation10 + $0x44] ss:$16 sps:$4 sm:$0xff] (!%p1421_p0)   ;;  %v1673_v13 = vld [vmem:[#allocation10 + $0x4c] ss:$16 sps:$4 sm:$0xff] (!%p1421_p0)   ;;  %v1675_v14 = vld [vmem:[#allocation10 + $0x40] ss:$16 sps:$4 sm:$0xff] (!%p1421_p0)  }
  0xb0   : > { %639 = vmatprep.subr.bf16.mxu1 (!%p1421_p0), %v1667_v9  ;;  %v1676_v15 = vld [vmem:[#allocation10 + $0x48] ss:$16 sps:$4 sm:$0xff] (!%p1421_p0)   ;;  %v1677_v16 = vld [vmem:[#allocation10 + $0x64] ss:$16 sps:$4 sm:$0xff] (!%p1421_p0)   ;;  %v1679_v17 = vld [vmem:[#allocation10 + $0x6c] ss:$16 sps:$4 sm:$0xff] (!%p1421_p0)  }
  0xb1   : > { %v1681_v18 = vld [vmem:[#allocation10 + $0x60] ss:$16 sps:$4 sm:$0xff] (!%p1421_p0)   ;;  %v1682_v19 = vld [vmem:[#allocation10 + $0x68] ss:$16 sps:$4 sm:$0xff] (!%p1421_p0)   ;;  %v1683_v20 = vld [vmem:[#allocation10 + $0x84] ss:$16 sps:$4 sm:$0xff] (!%p1421_p0)  }
  0xb2   : > { %389 = vadd.xlane.f32.xlu0 (!%p1421_p0), %v386_v6  ;;  %597 = vmatpush1.bf16.msra.mxu0 (!%p1421_p0), %v1669_v10  ;;  %v1685_v21 = vld [vmem:[#allocation10 + $0x8c] ss:$16 sps:$4 sm:$0xff] (!%p1421_p0)   ;;  %v1687_v22 = vld [vmem:[#allocation10 + $0x80] ss:$16 sps:$4 sm:$0xff] (!%p1421_p0)   ;;  %v1688_v23 = vld [vmem:[#allocation10 + $0x88] ss:$16 sps:$4 sm:$0xff] (!%p1421_p0)  }
  0xb3   : > { %640 = vmatpush1.bf16.msra.mxu1 %v1670_v11  ;;  %598 = vmatprep.subr.bf16.mxu0 %v1671_v12  ;;  %v1689_v24 = vld [vmem:[#allocation10 + $0xa4] ss:$16 sps:$4 sm:$0xff]   ;;  %v1691_v25 = vld [vmem:[#allocation10 + $0xac] ss:$16 sps:$4 sm:$0xff]   ;;  %v1693_v26 = vld [vmem:[#allocation10 + $0xa0] ss:$16 sps:$4 sm:$0xff]  }
  0xb4   : > { %641 = vmatprep.subr.bf16.mxu1 %v1673_v13  ;;  %v1694_v27 = vld [vmem:[#allocation10 + $0xa8] ss:$16 sps:$4 sm:$0xff]   ;;  %v1695_v28 = vld [vmem:[#allocation10 + $0xc4] ss:$16 sps:$4 sm:$0xff]   ;;  %v1697_v29 = vld [vmem:[#allocation10 + $0xcc] ss:$16 sps:$4 sm:$0xff]  }
  0xb5   : > { %v1699_v31 = vld [vmem:[#allocation10 + $0xc0] ss:$16 sps:$4 sm:$0xff]   ;;  %v1700_v32 = vld [vmem:[#allocation10 + $0xc8] ss:$16 sps:$4 sm:$0xff]   ;;  %v1701_v33 = vld [vmem:[#allocation10 + $0xe4] ss:$16 sps:$4 sm:$0xff]  }
  0xb6   : > { %599 = vmatpush1.bf16.msra.mxu0 %v1675_v14  ;;  %v1703_v34 = vld [vmem:[#allocation10 + $0xec] ss:$16 sps:$4 sm:$0xff]   ;;  %v1705_v35 = vld [vmem:[#allocation10 + $0xe0] ss:$16 sps:$4 sm:$0xff]   ;;  %v1706_v36 = vld [vmem:[#allocation10 + $0xe8] ss:$16 sps:$4 sm:$0xff]  }
  0xb7   : > { %642 = vmatpush1.bf16.msra.mxu1 %v1676_v15  ;;  %600 = vmatprep.subr.bf16.mxu0 %v1677_v16  ;;  %689 = vst [vmem:[#allocation3 + $0x8] sm:$0xff] %v2059_v50 }
  0xb8   : > { %643 = vmatprep.subr.bf16.mxu1 %v1679_v17 }
  0xba   : > { %601 = vmatpush1.bf16.msra.mxu0 %v1681_v18 }
  0xbb   : > { %644 = vmatpush1.bf16.msra.mxu1 %v1682_v19  ;;  %602 = vmatprep.subr.bf16.mxu0 %v1683_v20 }
  0xbc   : > { %645 = vmatprep.subr.bf16.mxu1 %v1685_v21 }
  0xbe   : > { %603 = vmatpush1.bf16.msra.mxu0 %v1687_v22 }
  0xbf   : > { %646 = vmatpush1.bf16.msra.mxu1 %v1688_v23  ;;  %604 = vmatprep.subr.bf16.mxu0 %v1689_v24 }
  0xc0   : > { %647 = vmatprep.subr.bf16.mxu1 %v1691_v25 }
  0xc2   : > { %605 = vmatpush1.bf16.msra.mxu0 %v1693_v26 }
  0xc3   : > { %648 = vmatpush1.bf16.msra.mxu1 %v1694_v27  ;;  %606 = vmatprep.subr.bf16.mxu0 %v1695_v28 }
  0xc4   : > { %649 = vmatprep.subr.bf16.mxu1 %v1697_v29 }
  0xc6   : > { %607 = vmatpush1.bf16.msra.mxu0 %v1699_v31 }
  0xc7   : > { %650 = vmatpush1.bf16.msra.mxu1 %v1700_v32  ;;  %608 = vmatprep.subr.bf16.mxu0 %v1701_v33 }
  0xc8   : > { %651 = vmatprep.subr.bf16.mxu1 %v1703_v34 }
  0xca   : > { %609 = vmatpush1.bf16.msra.mxu0 %v1705_v35 }
  0xcb   : > { %652 = vmatpush1.bf16.msra.mxu1 %v1706_v36 }
 0x13b   : > { %v388_v37 = vpop.xlane.xlu0 %387 }
 0x13c   : > { %v391_v38 = vmul.f32 0.03125, %v388_v37 }
 0x13e   : > { %v393_v39 = vadd.f32 1e-06, %v391_v38 }
 0x13f   : > { %v390_v40 = vpop.xlane.xlu0 %389 }
 0x140   : > { %1707 = vrsqrt.f32 %v393_v39  ;;  %v392_v41 = vmul.f32 0.03125, %v390_v40 }
 0x142   : > { %v394_v42 = vadd.f32 1e-06, %v392_v41 }
 0x144   : > { %1709 = vrsqrt.f32 %v394_v42 }
 0x14a   : > { %v1708_v43 = vpop.eup %1707 }
 0x14b   : > { %v397_v44 = vmul.f32 %v1708_v43, %v2338_v0 }
 0x14d   : > { %v399_v47 = vmul.f32 0.70710677, %v397_v44 }
 0x14e   : > { %v1710_v45 = vpop.eup %1709 }
 0x14f   : > { %v398_v46 = vmul.f32 %v1710_v45, %v2340_v1 }
 0x151   : > { %v400_v48 = vmul.f32 0.70710677, %v398_v46 }
 0x153   : > { %v401_v49 = vpack.c.bf16 %v400_v48, %v399_v47 }
 0x155   : > { %627 = vmatmul.mubr.bf16.vlgmr.msra.gmra.mrb[0].mxu0 %v401_v49  ;;  %670 = vmatmul.mubr.bf16.vlgmr.msra.gmra.mrb[0].mxu1 %v401_v49 }
 0x228   : > { %v628_v51 = vpop.f32.mrb[0].mxu0  ;;  %v671_v52 = vpop.f32.mrb[0].mxu1 }
 0x229   : > { %680 = vst [vmem:[#allocation4] sm:$0xff] %v628_v51  ;;  %682 = vst [vmem:[#allocation4 + $0x10] sm:$0xff] %v671_v52  ;;  %v630_v53 = vpop.f32.mrb[1].mxu0  ;;  %v673_v54 = vpop.f32.mrb[1].mxu1 }
 0x22a   : > { %681 = vst [vmem:[#allocation4 + $0x8] sm:$0xff] %v630_v53  ;;  %683 = vst [vmem:[#allocation4 + $0x18] sm:$0xff] %v673_v54  ;;  %v632_v55 = vpop.f32.mrb[2].mxu0  ;;  %v675_v56 = vpop.f32.mrb[2].mxu1 }
 0x22b   : > { %684 = vst [vmem:[#allocation4 + $0x20] sm:$0xff] %v632_v55  ;;  %686 = vst [vmem:[#allocation4 + $0x30] sm:$0xff] %v675_v56  ;;  %v634_v57 = vpop.f32.mrb[3].mxu0  ;;  %v677_v58 = vpop.f32.mrb[3].mxu1 }
 0x22c   : > { %685 = vst [vmem:[#allocation4 + $0x28] sm:$0xff] %v634_v57  ;;  %687 = vst [vmem:[#allocation4 + $0x38] sm:$0xff] %v677_v58 }
 0x22d PF: > { %p1454_p5 = scmp.le.s32.totalorder %s2035_s24, 0 }
 0x22e   : > { %v1711_v59 = vld [vmem:[#allocation11 + $0x4] ss:$16 sps:$4 sm:$0xff] (!%p1454_p5)   ;;  %v1713_v60 = vld [vmem:[#allocation11 + $0xc] ss:$16 sps:$4 sm:$0xff] (!%p1454_p5)   ;;  %v2060_v61 = vmov (!%p1454_p5), 0  }
 0x22f   : > { %693 = sbr.rel (%p1454_p5) target bundleno = 808 (0x328), region = 76  ;;  %921 = vmatprep.mubr.bf16.mxu0 (!%p1454_p5), %v2060_v61  ;;  %964 = vmatprep.mubr.bf16.mxu1 (!%p1454_p5), %v2060_v61  ;;  %v1715_v62 = vld [vmem:[#allocation11] ss:$16 sps:$4 sm:$0xff] (!%p1454_p5)   ;;  %v1716_v63 = vld [vmem:[#allocation11 + $0x8] ss:$16 sps:$4 sm:$0xff] (!%p1454_p5)  }
 0x230   : > { %889 = vmatprep.subr.bf16.mxu0 (!%p1454_p5), %v1711_v59  ;;  %932 = vmatprep.subr.bf16.mxu1 (!%p1454_p5), %v1713_v60  ;;  %v1717_v0 = vld [vmem:[#allocation11 + $0x24] ss:$16 sps:$4 sm:$0xff] (!%p1454_p5)   ;;  %v1719_v1 = vld [vmem:[#allocation11 + $0x2c] ss:$16 sps:$4 sm:$0xff] (!%p1454_p5)   ;;  %v1721_v2 = vld [vmem:[#allocation11 + $0x20] ss:$16 sps:$4 sm:$0xff] (!%p1454_p5)  }
 0x231   : > { %890 = vmatpush1.bf16.msra.mxu0 (!%p1454_p5), %v1715_v62  ;;  %933 = vmatpush1.bf16.msra.mxu1 (!%p1454_p5), %v1716_v63  ;;  %v1722_v3 = vld [vmem:[#allocation11 + $0x28] ss:$16 sps:$4 sm:$0xff] (!%p1454_p5)   ;;  %v1723_v4 = vld [vmem:[#allocation11 + $0x44] ss:$16 sps:$4 sm:$0xff] (!%p1454_p5)   ;;  %v1725_v5 = vld [vmem:[#allocation11 + $0x4c] ss:$16 sps:$4 sm:$0xff] (!%p1454_p5)  }
 0x232   : > { %891 = vmatprep.subr.bf16.mxu0 (!%p1454_p5), %v1717_v0  ;;  %934 = vmatprep.subr.bf16.mxu1 (!%p1454_p5), %v1719_v1  ;;  %v1727_v6 = vld [vmem:[#allocation11 + $0x40] ss:$16 sps:$4 sm:$0xff] (!%p1454_p5)   ;;  %v1728_v7 = vld [vmem:[#allocation11 + $0x48] ss:$16 sps:$4 sm:$0xff] (!%p1454_p5)   ;;  %v1729_v8 = vld [vmem:[#allocation11 + $0x64] ss:$16 sps:$4 sm:$0xff] (!%p1454_p5)  }
 0x233   : > { %v1731_v9 = vld [vmem:[#allocation11 + $0x6c] ss:$16 sps:$4 sm:$0xff] (!%p1454_p5)   ;;  %v1733_v10 = vld [vmem:[#allocation11 + $0x60] ss:$16 sps:$4 sm:$0xff] (!%p1454_p5)   ;;  %v1734_v11 = vld [vmem:[#allocation11 + $0x68] ss:$16 sps:$4 sm:$0xff] (!%p1454_p5)  }
 0x234   : > { %v1735_v12 = vld [vmem:[#allocation11 + $0x84] ss:$16 sps:$4 sm:$0xff] (!%p1454_p5)   ;;  %v1737_v13 = vld [vmem:[#allocation11 + $0x8c] ss:$16 sps:$4 sm:$0xff] (!%p1454_p5)   ;;  %v1739_v14 = vld [vmem:[#allocation11 + $0x80] ss:$16 sps:$4 sm:$0xff] (!%p1454_p5)  }
 0x235   : > { %892 = vmatpush1.bf16.msra.mxu0 (!%p1454_p5), %v1721_v2  ;;  %935 = vmatpush1.bf16.msra.mxu1 (!%p1454_p5), %v1722_v3  ;;  %v1740_v15 = vld [vmem:[#allocation11 + $0x88] ss:$16 sps:$4 sm:$0xff] (!%p1454_p5)   ;;  %v1741_v16 = vld [vmem:[#allocation11 + $0xa4] ss:$16 sps:$4 sm:$0xff] (!%p1454_p5)   ;;  %v1743_v17 = vld [vmem:[#allocation11 + $0xac] ss:$16 sps:$4 sm:$0xff] (!%p1454_p5)  }
 0x236   : > { %893 = vmatprep.subr.bf16.mxu0 %v1723_v4  ;;  %936 = vmatprep.subr.bf16.mxu1 %v1725_v5  ;;  %v1745_v18 = vld [vmem:[#allocation11 + $0xa0] ss:$16 sps:$4 sm:$0xff]   ;;  %v1746_v19 = vld [vmem:[#allocation11 + $0xa8] ss:$16 sps:$4 sm:$0xff]   ;;  %v1747_v20 = vld [vmem:[#allocation11 + $0xc4] ss:$16 sps:$4 sm:$0xff]  }
 0x237   : > { %v1749_v21 = vld [vmem:[#allocation11 + $0xcc] ss:$16 sps:$4 sm:$0xff]   ;;  %v1751_v22 = vld [vmem:[#allocation11 + $0xc0] ss:$16 sps:$4 sm:$0xff]   ;;  %v1752_v23 = vld [vmem:[#allocation11 + $0xc8] ss:$16 sps:$4 sm:$0xff]  }
 0x238   : > { %v1753_v24 = vld [vmem:[#allocation11 + $0xe4] ss:$16 sps:$4 sm:$0xff]   ;;  %v1755_v25 = vld [vmem:[#allocation11 + $0xec] ss:$16 sps:$4 sm:$0xff]   ;;  %v1757_v26 = vld [vmem:[#allocation11 + $0xe0] ss:$16 sps:$4 sm:$0xff]  }
 0x239   : > { %894 = vmatpush1.bf16.msra.mxu0 %v1727_v6  ;;  %937 = vmatpush1.bf16.msra.mxu1 %v1728_v7  ;;  %v1758_v27 = vld [vmem:[#allocation11 + $0xe8] ss:$16 sps:$4 sm:$0xff]   ;;  %v694_v28 = vld [vmem:[#allocation2] sm:$0xff] }
 0x23a   : > { %895 = vmatprep.subr.bf16.mxu0 %v1729_v8  ;;  %938 = vmatprep.subr.bf16.mxu1 %v1731_v9  ;;  %v695_v29 = vld [vmem:[#allocation2 + $0x8] sm:$0xff] }
 0x23b   : > { %v696_v30 = vpack.c.bf16 %v695_v29, %v694_v28 }
 0x23d   : > { %896 = vmatpush1.bf16.msra.mxu0 %v1733_v10  ;;  %939 = vmatpush1.bf16.msra.mxu1 %v1734_v11 }
 0x23e   : > { %897 = vmatprep.subr.bf16.mxu0 %v1735_v12  ;;  %940 = vmatprep.subr.bf16.mxu1 %v1737_v13 }
 0x241   : > { %898 = vmatpush1.bf16.msra.mxu0 %v1739_v14  ;;  %941 = vmatpush1.bf16.msra.mxu1 %v1740_v15 }
 0x242   : > { %899 = vmatprep.subr.bf16.mxu0 %v1741_v16  ;;  %942 = vmatprep.subr.bf16.mxu1 %v1743_v17 }
 0x245   : > { %900 = vmatpush1.bf16.msra.mxu0 %v1745_v18  ;;  %943 = vmatpush1.bf16.msra.mxu1 %v1746_v19 }
 0x246   : > { %901 = vmatprep.subr.bf16.mxu0 %v1747_v20  ;;  %944 = vmatprep.subr.bf16.mxu1 %v1749_v21 }
 0x249   : > { %902 = vmatpush1.bf16.msra.mxu0 %v1751_v22  ;;  %945 = vmatpush1.bf16.msra.mxu1 %v1752_v23 }
 0x24a   : > { %903 = vmatprep.subr.bf16.mxu0 %v1753_v24  ;;  %946 = vmatprep.subr.bf16.mxu1 %v1755_v25 }
 0x24d   : > { %904 = vmatpush1.bf16.msra.mxu0 %v1757_v26  ;;  %947 = vmatpush1.bf16.msra.mxu1 %v1758_v27 }
 0x250   : > { %922 = vmatmul.mubr.bf16.vlgmr.msra.gmra.mrb[0].mxu0 %v696_v30  ;;  %965 = vmatmul.mubr.bf16.vlgmr.msra.gmra.mrb[0].mxu1 %v696_v30 }
 0x323   : > { %v923_v31 = vpop.f32.mrb[0].mxu0  ;;  %v966_v32 = vpop.f32.mrb[0].mxu1 }
 0x324   : > { %975 = vst [vmem:[#allocation4] sm:$0xff] %v923_v31  ;;  %977 = vst [vmem:[#allocation4 + $0x10] sm:$0xff] %v966_v32  ;;  %v925_v33 = vpop.f32.mrb[1].mxu0  ;;  %v968_v34 = vpop.f32.mrb[1].mxu1 }
 0x325   : > { %976 = vst [vmem:[#allocation4 + $0x8] sm:$0xff] %v925_v33  ;;  %978 = vst [vmem:[#allocation4 + $0x18] sm:$0xff] %v968_v34  ;;  %v927_v35 = vpop.f32.mrb[2].mxu0  ;;  %v970_v36 = vpop.f32.mrb[2].mxu1 }
 0x326   : > { %979 = vst [vmem:[#allocation4 + $0x20] sm:$0xff] %v927_v35  ;;  %981 = vst [vmem:[#allocation4 + $0x30] sm:$0xff] %v970_v36  ;;  %v929_v37 = vpop.f32.mrb[3].mxu0  ;;  %v972_v38 = vpop.f32.mrb[3].mxu1 }
 0x327   : > { %980 = vst [vmem:[#allocation4 + $0x28] sm:$0xff] %v929_v37  ;;  %982 = vst [vmem:[#allocation4 + $0x38] sm:$0xff] %v972_v38 }
 0x328 PF: > { %v993_v40 = vld [vmem:[%s2320_s8 + $0x10] sm:$0xff]  ;;  %v991_v49 = vld [vmem:[%s2320_s8] sm:$0xff]  ;;  %v992_v50 = vld [vmem:[%s2320_s8 + $0x8] sm:$0xff]  ;;  %vm2062_vm0 = vmmov 0   ;;  %s1511_s19 = sshll.u32 %s2035_s24, 8  ;;  %s1268_s14 = sshll.u32 %s2335_s15, 4  ;;  %s2376_s14 = int_to_ptr.vmem [resolvable:$true] %s1268_s14 }
 0x329   : > { %v1001_v41 = vmul.f32 2.039298, %v993_v40  ;;  %v997_v43 = vld [vmem:[%s2320_s8 + $0x30] sm:$0xff]  ;;  %v999_v51 = vmul.f32 2.039298, %v991_v49  ;;  %v995_v53 = vld [vmem:[%s2320_s8 + $0x20] sm:$0xff] }
 0x32a   : > { %v1005_v44 = vmul.f32 2.039298, %v997_v43  ;;  %v1000_v54 = vmul.f32 2.039298, %v992_v50  ;;  %v996_v57 = vld [vmem:[%s2320_s8 + $0x28] sm:$0xff]  ;;  %v1093_v33 = vld [vmem:[#allocation3] sm:$0xff] }
 0x32b   : > { %v985_v39 = vld [vmem:[#allocation4 + $0x10] sm:$0xff]  ;;  %v983_v52 = vld [vmem:[#allocation4] sm:$0xff]  ;;  %v1003_v58 = vmul.f32 2.039298, %v995_v53  ;;  %v1004_v63 = vmul.f32 2.039298, %v996_v57 }
 0x32c   : > { %v1009_v45 = vadd.f32 %v1001_v41, %v985_v39  ;;  %v984_v55 = vld [vmem:[#allocation4 + $0x8] sm:$0xff]  ;;  %v1007_v56 = vadd.f32 %v999_v51, %v983_v52  ;;  %v1493_v12 = vld [vmem:[%s2430_s4] ss:$0 sm:$0xff]  ;;  %v1494_v15 = vld [vmem:[%s2430_s4 + $0x1] ss:$0 sm:$0xff]  ;;  %s1252_s7 = scalar_lea.sflag [#allocation7], %s2317_s9 }
 0x32d   : > { %v989_v42 = vld [vmem:[#allocation4 + $0x30] sm:$0xff]  ;;  %v987_v59 = vld [vmem:[#allocation4 + $0x20] sm:$0xff]  ;;  %v1008_v61 = vadd.f32 %v1000_v54, %v984_v55  ;;  %v1094_v41 = vld [vmem:[#allocation3 + $0x8] sm:$0xff]  ;;  %v2061_v54 = vmov 0.0   ;;  %s1949_s27 = scalar_lea.vmem %s2376_s14, 256  ;;  %s2063_s24 = smov [#allocation14]  }
 0x32e   : > { %v1013_v46 = vadd.f32 %v1005_v44, %v989_v42  ;;  %v1055_v47 = vmul.f32 %v1009_v45, %v1009_v45  ;;  %v1487_v0 = vmul.f32 -1.442695, %v1007_v56  ;;  %v988_v1 = vld [vmem:[#allocation4 + $0x28] sm:$0xff]  ;;  %v1011_v2 = vadd.f32 %v1003_v58, %v987_v59  ;;  %v1759_v53 = vld [vmem:[#allocation13] sm:$0xff]   ;;  %1521 = vmatprep.subr.bf16.mxu0 %v2061_v54  ;;  %v1760_v55 = vld [vmem:[#allocation13 + $0x8] sm:$0xff]   ;;  %1537 = vmatprep.mubr.msk.bf16.mxu0 %vm2062_vm0, %v2061_v54  ;;  %p1950_p9 = scmp.ne.s32.totalorder %s2376_s14, %s1949_s27  ;;  %s1953_s29 = sshll.u32 %s2063_s24, 4  ;;  %s1954_s29 = int_to_ptr.vmem [resolvable:$false] %s1953_s29 }
 0x32f   : > { %v1489_v5 = vmul.f32 -1.442695, %v1008_v61  ;;  %v1012_v7 = vadd.f32 %v1004_v63, %v988_v1  ;;  %1522 = vmatpush3.bf16.msra.mxu0 %v1759_v53  ;;  %v1761_v56 = vld [vmem:[#allocation13 + $0x10] sm:$0xff]   ;;  %v1762_v57 = vld [vmem:[#allocation13 + $0x18] sm:$0xff]   ;;  %v1763_v58 = vld [vmem:[#allocation13 + $0x20] sm:$0xff]   ;;  %s1955_s11 = scalar_lea.vmem %s1954_s29, 512  ;;  %p1956_p3 = scmp.lt.s32.totalorder %s2376_s14, %s1954_s29 }
 0x330   : > { %1057 = vadd.xlane.f32.xlu0 %v1055_v47  ;;  %v1056_v48 = vmul.f32 %v1013_v46, %v1013_v46  ;;  %v1488_v8 = vmul.f32 -1.442695, %v1011_v2  ;;  %1523 = vmatprep.subr.bf16.mxu0 %v2061_v54  ;;  %v1764_v59 = vld [vmem:[#allocation13 + $0x28] sm:$0xff]   ;;  %v1766_v61 = vld [vmem:[#allocation13 + $0x38] sm:$0xff]   ;;  %p1951_p12 = pnand %p1950_p9, %p2258_p8  ;;  %p1957_p7 = scmp.lt.s32.totalorder %s1955_s11, %s1949_s27 }
 0x331   : > { %v1490_v10 = vmul.f32 -1.442695, %v1012_v7  ;;  %v998_v1 = vld [vmem:[%s2320_s8 + $0x38] sm:$0xff] }
 0x332   : > { %p1952_p11 = pneg %p1951_p12  ;;  %p1958_p1 = por %p1957_p7, %p1956_p3 }
 0x333   : > { %1524 = vmatpush3.bf16.msra.mxu0 %v1760_v55 }
 0x334   : > { %1059 = vadd.xlane.f32.xlu0 %v1056_v48  ;;  %1525 = vmatprep.subr.bf16.mxu0 %v2061_v54  ;;  %p1959_p10 = pnand %p1958_p1, %p1952_p11 }
 0x337   : > { %1526 = vmatpush3.bf16.msra.mxu0 %v1761_v56 }
 0x338   : > { %1527 = vmatprep.subr.bf16.mxu0 %v2061_v54 }
 0x33b   : > { %1528 = vmatpush3.bf16.msra.mxu0 %v1762_v57 }
 0x33c   : > { %1529 = vmatprep.subr.bf16.mxu0 %v2061_v54 }
 0x33f   : > { %1530 = vmatpush3.bf16.msra.mxu0 %v1763_v58 }
 0x340   : > { %1531 = vmatprep.subr.bf16.mxu0 %v2061_v54 }
 0x343   : > { %1532 = vmatpush3.bf16.msra.mxu0 %v1764_v59 }
 0x344   : > { %1533 = vmatprep.subr.bf16.mxu0 %v2061_v54 }
 0x3bd   : > { %v1058_v60 = vpop.xlane.xlu0 %1057 }
 0x3be   : > { %v1061_v62 = vmul.f32 0.03125, %v1058_v60  ;;  %v1765_v60 = vld [vmem:[#allocation13 + $0x30] sm:$0xff]  }
 0x3bf   : > { %1534 = vmatpush3.bf16.msra.mxu0 %v1765_v60 }
 0x3c0   : > { %v1063_v3 = vadd.f32 1e-06, %v1061_v62  ;;  %1535 = vmatprep.subr.bf16.mxu0 %v2061_v54  ;;  %v994_v62 = vld [vmem:[%s2320_s8 + $0x18] sm:$0xff]  ;;  %s2374_s8 = scalar_lea.hbm %s2432_s6, %s1511_s19 }
 0x3c1   : > { %v1060_v4 = vpop.xlane.xlu0 %1059  ;;  %v1002_v63 = vmul.f32 2.039298, %v994_v62 }
 0x3c2   : > { %1767 = vrsqrt.f32 %v1063_v3  ;;  %v1062_v6 = vmul.f32 0.03125, %v1060_v4 }
 0x3c3   : > { %1769 = vpow2.f32 %v1487_v0  ;;  %1536 = vmatpush3.bf16.msra.mxu0 %v1766_v61  ;;  %v986_v0 = vld [vmem:[#allocation4 + $0x18] sm:$0xff] }
 0x3c4   : > { %v1064_v9 = vadd.f32 1e-06, %v1062_v6  ;;  %1771 = vpow2.f32 %v1489_v5  ;;  %v1010_v2 = vadd.f32 %v1002_v63, %v986_v0  ;;  %v1006_v5 = vmul.f32 2.039298, %v998_v1  ;;  %v990_v6 = vld [vmem:[#allocation4 + $0x38] sm:$0xff] }
 0x3c6   : > { %1773 = vrsqrt.f32 %v1064_v9 }
 0x3c7   : > { %1775 = vpow2.f32 %v1488_v8  ;;  %v1491_v8 = vmul.f32 -1.442695, %v1010_v2 }
 0x3c8   : > { %1777 = vpow2.f32 %v1490_v10  ;;  %v1014_v10 = vadd.f32 %v1006_v5, %v990_v6 }
 0x3cc   : > { %v1768_v11 = vpop.eup %1767 }
 0x3cd   : > { %v1770_v13 = vpop.eup %1769  ;;  %v1067_v14 = vmul.f32 %v1768_v11, %v1009_v45 }
 0x3ce   : > { %v1772_v16 = vpop.eup %1771  ;;  %v1021_v19 = vadd.f32 1.0, %v1770_v13  ;;  %v1492_v13 = vmul.f32 -1.442695, %v1014_v10 }
 0x3cf   : > { %v1073_v17 = vmul.f32 %v1493_v12, %v1067_v14  ;;  %v1033_v24 = vadd.f32 1.0, %v1772_v16 }
 0x3d0   : > { %v1774_v18 = vpop.eup %1773  ;;  %1779 = vrcp.f32 %v1021_v19 }
 0x3d1   : > { %v1776_v20 = vpop.eup %1775  ;;  %v1068_v21 = vmul.f32 %v1774_v18, %v1013_v46  ;;  %v1079_v22 = vadd.f32 %v1494_v15, %v1073_v17  ;;  %v1496_v17 = vld [vmem:[%s2430_s4 + $0x3] ss:$0 sm:$0xff] }
 0x3d2   : > { %v1778_v26 = vpop.eup %1777  ;;  %v1022_v27 = vadd.f32 1.0, %v1776_v20 }
 0x3d3   : > { %v1074_v23 = vmul.f32 %v1493_v12, %v1068_v21  ;;  %v1083_v25 = vmul.f32 0.70710677, %v1079_v22  ;;  %v1034_v29 = vadd.f32 1.0, %v1778_v26  ;;  %v1081_v34 = vmul.f32 0.5, %v1079_v22 }
 0x3d5   : > { %1781 = verf.f32 %v1083_v25  ;;  %v1080_v28 = vadd.f32 %v1494_v15, %v1074_v23  ;;  %v1495_v15 = vld [vmem:[%s2430_s4 + $0x2] ss:$0 sm:$0xff] }
 0x3d6   : > { %1783 = vrcp.f32 %v1033_v24 }
 0x3d7   : > { %v1084_v30 = vmul.f32 0.70710677, %v1080_v28  ;;  %1785 = vrcp.f32 %v1022_v27  ;;  %v1082_v43 = vmul.f32 0.5, %v1080_v28 }
 0x3d9   : > { %1787 = verf.f32 %v1084_v30 }
 0x3da   : > { %1789 = vrcp.f32 %v1034_v29  ;;  %v1780_v31 = vpop.eup %1779 }
 0x3db   : > { %v1095_v39 = vmul.f32 %v1780_v31, %v1093_v33 }
 0x3df   : > { %v1782_v32 = vpop.eup %1781 }
 0x3e0   : > { %v1087_v35 = vadd.f32 1.0, %v1782_v32  ;;  %v1784_v36 = vpop.eup %1783 }
 0x3e1   : > { %v1786_v37 = vpop.eup %1785 }
 0x3e2   : > { %v1089_v38 = vmul.f32 %v1087_v35, %v1081_v34  ;;  %v1096_v48 = vmul.f32 %v1786_v37, %v1094_v41 }
 0x3e3   : > { %v1788_v40 = vpop.eup %1787 }
 0x3e4   : > { %v1091_v42 = vmul.f32 %v1784_v36, %v1089_v38  ;;  %v1088_v44 = vadd.f32 1.0, %v1788_v40  ;;  %v1790_v45 = vpop.eup %1789 }
 0x3e6   : > { %v1097_v46 = vadd.f32 %v1095_v39, %v1091_v42  ;;  %v1090_v47 = vmul.f32 %v1088_v44, %v1082_v43 }
 0x3e8   : > { %v1101_v49 = vmul.f32 %v1097_v46, %v1097_v46  ;;  %1099 = vst [vmem:[#allocation3] sm:$0xff] %v1097_v46  ;;  %v1092_v50 = vmul.f32 %v1790_v45, %v1090_v47 }
 0x3ea   : > { %1103 = vadd.xlane.f32.xlu1 %v1101_v49  ;;  %v1098_v51 = vadd.f32 %v1096_v48, %v1092_v50 }
 0x3ec   : > { %1100 = vst [vmem:[#allocation3 + $0x8] sm:$0xff] %v1098_v51  ;;  %v1102_v52 = vmul.f32 %v1098_v51, %v1098_v51 }
 0x3ee   : > { %1105 = vadd.xlane.f32.xlu1 %v1102_v52 }
 0x477   : > { %v1104_v3 = vpop.xlane.xlu1 %1103 }
 0x478   : > { %v1107_v4 = vmul.f32 0.03125, %v1104_v3 }
 0x47a   : > { %v1109_v7 = vadd.f32 1e-06, %v1107_v4 }
 0x47b   : > { %v1106_v9 = vpop.xlane.xlu1 %1105 }
 0x47c   : > { %1791 = vrsqrt.f32 %v1109_v7  ;;  %v1108_v11 = vmul.f32 0.03125, %v1106_v9 }
 0x47d   : > { %1793 = vpow2.f32 %v1491_v8 }
 0x47e   : > { %v1110_v12 = vadd.f32 1e-06, %v1108_v11 }
 0x480   : > { %1795 = vrsqrt.f32 %v1110_v12 }
 0x481   : > { %1797 = vpow2.f32 %v1492_v13 }
 0x486   : > { %v1792_v14 = vpop.eup %1791 }
 0x487   : > { %v1113_v16 = vmul.f32 %v1792_v14, %v1097_v46  ;;  %v1794_v18 = vpop.eup %1793 }
 0x488   : > { %v1045_v23 = vadd.f32 1.0, %v1794_v18 }
 0x489   : > { %v1119_v19 = vmul.f32 %v1495_v15, %v1113_v16 }
 0x48a   : > { %v1796_v20 = vpop.eup %1795 }
 0x48b   : > { %v1125_v21 = vadd.f32 %v1496_v17, %v1119_v19  ;;  %v1114_v22 = vmul.f32 %v1796_v20, %v1098_v51  ;;  %v1798_v26 = vpop.eup %1797 }
 0x48c   : > { %v1046_v28 = vadd.f32 1.0, %v1798_v26 }
 0x48d   : > { %v1129_v24 = vmul.f32 0.70710677, %v1125_v21  ;;  %v1120_v25 = vmul.f32 %v1495_v15, %v1114_v22  ;;  %v1127_v31 = vmul.f32 0.5, %v1125_v21 }
 0x48f   : > { %1799 = verf.f32 %v1129_v24  ;;  %v1126_v27 = vadd.f32 %v1496_v17, %v1120_v25 }
 0x490   : > { %1801 = vrcp.f32 %v1045_v23 }
 0x491   : > { %v1130_v29 = vmul.f32 0.70710677, %v1126_v27  ;;  %v1128_v37 = vmul.f32 0.5, %v1126_v27 }
 0x493   : > { %1803 = verf.f32 %v1130_v29 }
 0x494   : > { %1805 = vrcp.f32 %v1046_v28 }
 0x499   : > { %v1800_v30 = vpop.eup %1799 }
 0x49a   : > { %v1133_v32 = vadd.f32 1.0, %v1800_v30  ;;  %v1802_v33 = vpop.eup %1801 }
 0x49c   : > { %v1135_v34 = vmul.f32 %v1133_v32, %v1127_v31 }
 0x49d   : > { %v1804_v35 = vpop.eup %1803 }
 0x49e   : > { %v1137_v36 = vmul.f32 %v1802_v33, %v1135_v34  ;;  %v1134_v38 = vadd.f32 1.0, %v1804_v35  ;;  %v1806_v39 = vpop.eup %1805 }
 0x4a0   : > { %1139 = vst [vmem:[#allocation2] sm:$0xff] %v1137_v36  ;;  %v1136_v40 = vmul.f32 %v1134_v38, %v1128_v37 }
 0x4a2   : > { %v1138_v41 = vmul.f32 %v1806_v39, %v1136_v40 }
 0x4a4   : > { %1140 = vst [vmem:[#allocation2 + $0x8] sm:$0xff] %v1138_v41  ;;  %v1143_v42 = vpack.c.bf16 %v1138_v41, %v1137_v36 }
 0x4a6   : > { %1538 = vmatmul.mubr.bf16.vlgmr.msra.gmra.mrb[0].mxu0 %v1143_v42 }
 0x579   : > { %v1242_v43 = vpop.f32.mrb[0].mxu0 }
 0x57a   : > { %1249 = vst [vmem:[%s2335_s15] sm:$0xff] %v1242_v43  ;;  %v1539_v44 = vpop.f32.mrb[1].mxu0 }
 0x57b   : > { %v1245_v45 = vpop.f32.mrb[2].mxu0 }
 0x57c   : > { %1250 = vst [vmem:[%s2335_s15 + $0x8] sm:$0xff] %v1245_v45  ;;  %v1540_v46 = vpop.f32.mrb[3].mxu0 }
 0x57d   : > { %1962 = shalt.err (!%p1959_p10)
}
 0x57e   : > { %s1963_s15 = scalar_lea.hbm %s2374_s8, 256  ;;  %s1967_s18 = scalar_lea.hbm %s2432_s6, 768 }
 0x57f   : > { %p1964_p2 = scmp.ne.s32.totalorder %s2374_s8, %s1963_s15  ;;  %p1968_p13 = scmp.lt.u32.totalorder %s2374_s8, %s2432_s6 }
 0x580   : > { %p1969_p0 = scmp.lt.u32.totalorder %s1967_s18, %s1963_s15  ;;  %p1971_p9 = scmp.lt.u32.totalorder %s1963_s15, %s2374_s8 }
 0x581   : > { %p1965_p4 = pnand %p1964_p2, %p2258_p8 }
 0x582   : > { %p1970_p5 = por %p1969_p0, %p1968_p13 }
 0x583   : > { %p1966_p6 = pneg %p1965_p4 }
 0x584   : > { %p1972_p12 = por %p1971_p9, %p1970_p5 }
 0x586   : > { %p1973_p11 = pnand %p1972_p12, %p1966_p6 }
 0x588   : > { %1976 = shalt.err (!%p1973_p11)
}
 0x589   : > { %s2064_s19 = smov 128   ;;  %s2065_s12 = smov 8  }
 0x58a   : > { %1559 = dma.vmem_to_hbm [thread:$0]  (%p2258_p8), %s2376_s14, 256, %s2374_s8, %s1252_s7, %s2064_s19, %s2064_s19, %s2065_s12  }
 0x58b PF: > { %s2456_s17 = sld [smem:[#allocation20_spill]]  ;;  %p1591_p3 = scmp.ge.s32.totalorder %s2043_s26, 2 }
 0x58c   : > { %s1283_s27 = sand.u32 1, %s2023_s21  }
 0x58d   : > { %s1284_s24 = scalar_lea.sflag [#allocation7], %s1283_s27 }
 0x591   : > { %p2457_p7 = scmp.ne.s32.totalorder %s2456_s17, 0 }
 0x593   : > { %p1579_p1 = pnand %p1591_p3, %p2457_p7 }
 0x595   : > { %2018 = dma.done.wait (!%p1579_p1), %s1284_s24, 256  }
 0x596   : > { %2020 = vsyncadd (!%p1579_p1), %s1284_s24, 4294967040  ;;  %s24_s26 = sadd.s32 1, %s2043_s26   ;;  %s2458_s21 = smov %s2027_s22 }
 0x597   : > { %p21_p10 = scmp.ge.s32.totalorder %s24_s26, 5   ;;  %s2459_s22 = smov %s2031_s23 }
 0x598   : > { %s2460_s23 = smov %s2268_s20  ;;  %s2461_s24 = smov %s2039_s25 }
 0x599   : > { %s2462_s25 = smov %s2464_s30  ;;  %23 = sbr.rel (!%p21_p10) target bundleno = 10 (0xa), region = 120 }
 0x5a0   :  { %1289 = vsyncpa [#allocation6], 1 }
 0x5a1   :  { %1291 = vsyncpa [#allocation6 + $0x1], 1 }
 0x5a2   :  { %1292 = vsyncpa [#allocation9], 1 }
 0x5a3   :  { %1294 = vsyncpa [#allocation9 + $0x1], 1 }
 0x5a4   :  { %1295 = vsyncpa [#allocation12], 1 }
 0x5a5   :  { %1296 = vsyncpa [#allocation7], 1 }
 0x5a6   :  { %1298 = vsyncpa [#allocation7 + $0x1], 1 }

</bundles_post_ra>
